<compile_context>
chip_gen: v7x
topology: tpu7x:2x2x1
jax: 0.10.0
libtpu: 0.0.40
codegen_flags: <defaults>
</compile_context>

<pallas_src>
import math

import jax
import jax.numpy as jnp
from jax.experimental import pallas as pl
from jax.experimental.pallas import tpu as pltpu


def _round_up(x: int, m: int) -> int:
    return ((x + m - 1) // m) * m


def _vmem_capacity_bytes() -> int:
    try:
        return int(pltpu.get_tpu_info().vmem_capacity_bytes)
    except Exception:
        return 64 * 1024 * 1024  # conservative default (v7x per-core VMEM)


def _pick_token_tile(seq_len: int, batch: int, cap: int = 256) -> int:
    """Token-tile size T for the (1, T, D) output block.

    T always divides S and is either a multiple of 8 or equal to S, so the output
    BlockSpec's second-to-last dim is always legal.  For batch == 1 we prefer >= 2
    tiles so v7x's two TensorCores still have a grid axis to split."""
    limit = min(cap, seq_len)
    if batch == 1:
        limit = min(limit, max(8, seq_len // 2))
    best = None
    for t in range(8, limit + 1, 8):
        if seq_len % t == 0:
            best = t
    if best is None:
        best = seq_len  # block dim == full array dim: always legal
    return best


def _embed_resident_kernel(ids_ref, table_ref, pe_ref, out_ref):
    """Small-vocab fast path: the whole table is resident in VMEM.

    ids_ref  : (B*S,)     int32   SMEM (scalar prefetch)
    table_ref: (V, 1, D)  native  VMEM (whole table, loaded once)
    pe_ref   : (1, 1, D)  f32     VMEM (positional row for batch b -- module quirk)
    out_ref  : (1, T, D)  native  VMEM
    """
    _, tile, _ = out_ref.shape
    vocab = table_ref.shape[0]
    b = pl.program_id(0)
    t = pl.program_id(1)
    seq_len = pl.num_programs(1) * tile
    base = b * seq_len + t * tile

    pe = pe_ref[0].astype(jnp.float32)  # (1, D), hoisted out of the token loop

    for j in range(tile):  # static -> fully unrolled
        row = jnp.clip(ids_ref[base + j], 0, vocab - 1)   # in-kernel clamp (scalar slot)
        vec = table_ref[row].astype(jnp.float32)          # (1, D): dynamic untiled-axis read
        out_ref[0, pl.ds(j, 1), :] = (vec + pe).astype(out_ref.dtype)


def _embed_gather_kernel(ids_ref, table_hbm, pe_ref, out_ref, rows_vmem, sems):
    """Large-vocab path: table stays in HBM; rows are DMA-gathered, double-buffered.

    ids_ref  : (B*S,)     int32   SMEM (scalar prefetch)
    table_hbm: (V, D)     native  HBM (never fully loaded)
    pe_ref   : (1, 1, D)  f32     VMEM
    out_ref  : (1, T, D)  native  VMEM
    rows_vmem: (2, T, D)  native  VMEM (double-buffered gather landing pad)
    sems     : (2,)       DMA semaphores (one aggregate semaphore per slot)
    """
    _, tile, _ = rows_vmem.shape
    vocab = table_hbm.shape[0]
    b = pl.program_id(0)
    t = pl.program_id(1)
    n_tiles = pl.num_programs(1)
    seq_len = n_tiles * tile

    def issue(tile_idx, slot):
        # Fully unrolled DMA issue (static T): every row fetch is in flight before any
        # wait, all signaling the single aggregate semaphore for this slot.
        base = b * seq_len + tile_idx * tile
        for j in range(tile):
            row = jnp.clip(ids_ref[base + j], 0, vocab - 1)  # clamp -> no OOB DMA
            pltpu.make_async_copy(
                table_hbm.at[pl.ds(row, 1)],
                rows_vmem.at[slot, pl.ds(j, 1), :],
                sems.at[slot],
            ).start()

    slot = t % 2

    @pl.when(t == 0)          # prime the first tile of this batch row
    def _():
        issue(0, 0)

    @pl.when(t + 1 < n_tiles)  # prefetch the next tile while this one is consumed
    def _():
        issue(t + 1, 1 - slot)

    # ONE aggregate wait for all T row copies of this tile: each copy signals
    # sems[slot] with D*itemsize bytes; this descriptor is sized T*D*itemsize.
    wait_src = table_hbm.at[pl.ds(0, tile)] if vocab >= tile else rows_vmem.at[slot]
    pltpu.make_async_copy(wait_src, rows_vmem.at[slot], sems.at[slot]).wait()

    # pe add in f32 (v5e VPU has no bf16 ALU), store in the table's native dtype.
    out_ref[0] = (rows_vmem[slot].astype(jnp.float32)
                  + pe_ref[0].astype(jnp.float32)).astype(out_ref.dtype)


def transformer_embedding(ids, table, pe, *, force_gather=False):
    """TransformerEmbedding forward (inference).

    ids  : (B, S) integer token ids
    table: (V, D) embedding weight (gathered in its native dtype)
    pe   : (L, D) positional-encoding buffer with L >= B (the module adds pe[:B] --
           indexed by *batch*, not sequence -- broadcast over the sequence axis)
    returns (B, S, D) in the table's dtype.
    """
    B, S = ids.shape
    V, D = table.shape
    if pe.shape[0] < B or pe.shape[1] != D:
        raise ValueError("positional buffer must be (L >= B, D); module slices pe[:B]")

    itemsize = table.dtype.itemsize
    ids_flat = ids.reshape(B * S).astype(jnp.int32)          # clamped in-kernel, no clip pass
    pe_batch = pe[:B].reshape(B, 1, D).astype(jnp.float32)   # tiny (B, D) slice only

    T = _pick_token_tile(S, B)
    n_tiles = S // T
    grid = (B, n_tiles)

    vmem_cap = _vmem_capacity_bytes()
    # Resident layout is (V, 1, D): each row's (1, D) slab pads to (8, round_up(D,128)).
    table_resident_bytes = V * 8 * _round_up(D, 128) * itemsize
    out_block_bytes = _round_up(T, 8) * _round_up(D, 128) * itemsize
    use_resident = (not force_gather) and (2 * table_resident_bytes <= vmem_cap // 8)

    pe_spec = pl.BlockSpec((1, 1, D), lambda b, t, ids_sm: (b, 0, 0))
    out_spec = pl.BlockSpec((1, T, D), lambda b, t, ids_sm: (b, t, 0))
    out_shape = jax.ShapeDtypeStruct((B, S, D), table.dtype)

    cost = pl.CostEstimate(
        flops=B * S * D,
        transcendentals=0,
        bytes_accessed=(B * S * 4 + B * D * 4 + B * S * D * itemsize
                        + (table_resident_bytes if use_resident else B * S * D * itemsize)))

    if use_resident:
        grid_spec = pltpu.PrefetchScalarGridSpec(
            num_scalar_prefetch=1,
            grid=grid,
            in_specs=[pl.BlockSpec((V, 1, D), lambda b, t, ids_sm: (0, 0, 0)),  # loaded once
                      pe_spec],
            out_specs=out_spec)
        kernel = _embed_resident_kernel
        table_arg = table.reshape(V, 1, D)
        dim_sem = ("parallel", "parallel")
        vmem_limit = min(int(0.75 * vmem_cap),
                         max(32 << 20,
                             2 * table_resident_bytes + 4 * out_block_bytes + (4 << 20)))
    else:
        grid_spec = pltpu.PrefetchScalarGridSpec(
            num_scalar_prefetch=1,
            grid=grid,
            in_specs=[pl.BlockSpec(memory_space=pl.ANY),  # table stays in HBM
                      pe_spec],
            out_specs=out_spec,
            scratch_shapes=[pltpu.VMEM((2, T, D), table.dtype),
                            pltpu.SemaphoreType.DMA((2,))])
        kernel = _embed_gather_kernel
        table_arg = table
        # tile axis carries the cross-step prefetch dependence -> "arbitrary";
        # batch axis stays "parallel" for the v7x megacore split.
        dim_sem = ("parallel", "arbitrary")
        vmem_limit = 32 << 20

    return pl.pallas_call(
        kernel,
        out_shape=out_shape,
        grid_spec=grid_spec,
        compiler_params=pltpu.CompilerParams(
            dimension_semantics=dim_sem,
            vmem_limit_bytes=vmem_limit),
        cost_estimate=cost,
    )(ids_flat, table_arg, pe_batch)


def make_positional_encoding(max_seq_len: int, dim_model: int) -> jnp.ndarray:
    """Matches the PositionalEncoding buffer: shape (max_seq_len, dim_model).
    NOTE: assumes even dim_model (same quirk as the PyTorch reference)."""
    position = jnp.arange(max_seq_len, dtype=jnp.float32)[:, None]           # (L, 1)
    div_term = jnp.exp(jnp.arange(0, dim_model, 2, dtype=jnp.float32)
                       * (-math.log(10000.0) / dim_model))                   # (D/2,)
    pe = jnp.zeros((max_seq_len, dim_model), dtype=jnp.float32)
    pe = pe.at[:, 0::2].set(jnp.sin(position * div_term))
    pe = pe.at[:, 1::2].set(jnp.cos(position * div_term))
    return pe


if __name__ == "__main__":
    # Small shapes consistent with the module.
    B, S, D = 2, 8, 32          # batch, seq_len, dim_model
    V = 16                      # vocab_size
    MAX_SEQ_LEN = 60
    PADDING_IDX = 0
    assert B <= MAX_SEQ_LEN, "module quirk: pe is sliced by the batch index"

    key = jax.random.PRNGKey(0)
    k_emb, k_ids = jax.random.split(key)

    # Deterministic parameter init (nn.Embedding ~ N(0,1)); zero the padding row.
    emb_table = jax.random.normal(k_emb, (V, D), dtype=jnp.float32)
    emb_table = emb_table.at[PADDING_IDX].set(0.0)

    pe_full = make_positional_encoding(MAX_SEQ_LEN, D)   # (60, D) buffer

    ids = jax.random.randint(k_ids, (B, S), 0, V, dtype=jnp.int32)
    ids = ids.at[0, 0].set(PADDING_IDX)                  # exercise padding row

    # Pure-JAX reference of the exact PyTorch semantics (eval mode: dropout = identity).
    ref = emb_table[ids] + pe_full[:B][:, None, :]

    # Exercise both paths: VMEM-resident table (default for this tiny vocab) and the
    # HBM double-buffered gather path (forced).
    out_resident = jax.block_until_ready(transformer_embedding(ids, emb_table, pe_full))
    out_gather = jax.block_until_ready(
        transformer_embedding(ids, emb_table, pe_full, force_gather=True))

    assert out_resident.shape == (B, S, D)
    assert jnp.allclose(out_resident, ref, atol=1e-5, rtol=1e-5)
    assert jnp.allclose(out_gather, ref, atol=1e-5, rtol=1e-5)

    print("KERNEL_OK")
</pallas_src>

<mosaic_0001>
module attributes {stable_mosaic.version = 11 : i64} {
  func.func @_embed_resident_kernel(%arg0: i32, %arg1: i32, %arg2: memref<16xi32, #tpu.memory_space<smem>>, %arg3: memref<16x1x32xf32, #tpu.memory_space<vmem>>, %arg4: memref<1x1x32xf32, #tpu.memory_space<vmem>>, %arg5: memref<1x8x32xf32, #tpu.memory_space<vmem>>) attributes {dimension_semantics = [#tpu.dimension_semantics<parallel>, #tpu.dimension_semantics<parallel>], iteration_bounds = array<i64: 2, 1>, scalar_prefetch = 1 : i64, scratch_operands = 0 : i64, tpu.core_type = #tpu.core_type<tc>, window_params = [{pipeline_mode = #tpu.pipeline_mode<synchronous>, transform_indices = @transform_0, window_bounds = array<i64: 16, 1, 32>}, {transform_indices = @transform_1, window_bounds = array<i64: 1, 1, 32>}, {transform_indices = @transform_2, window_bounds = array<i64: 1, 8, 32>}]} {
    %c8_i32 = arith.constant 8 : i32
    %0 = arith.muli %arg0, %c8_i32 : i32
    %c8_i32_0 = arith.constant 8 : i32
    %1 = arith.muli %arg1, %c8_i32_0 : i32
    %2 = arith.addi %0, %1 : i32
    %c0 = arith.constant 0 : index
    %c0_1 = arith.constant 0 : index
    %c0_2 = arith.constant 0 : index
    %3 = vector.load %arg4[%c0, %c0_1, %c0_2] : memref<1x1x32xf32, #tpu.memory_space<vmem>>, vector<1x1x32xf32>
    %4 = vector.shape_cast %3 : vector<1x1x32xf32> to vector<1x32xf32>
    %c0_i32 = arith.constant 0 : i32
    %5 = arith.addi %2, %c0_i32 : i32
    %6 = arith.index_cast %5 : i32 to index
    %7 = memref.load %arg2[%6] : memref<16xi32, #tpu.memory_space<smem>>
    %c0_i32_3 = arith.constant 0 : i32
    %c15_i32 = arith.constant 15 : i32
    %8 = arith.maxsi %c0_i32_3, %7 : i32
    %9 = arith.minsi %c15_i32, %8 : i32
    %10 = arith.index_cast %9 : i32 to index
    %c0_4 = arith.constant 0 : index
    %c0_5 = arith.constant 0 : index
    %11 = vector.load %arg3[%10, %c0_4, %c0_5] : memref<16x1x32xf32, #tpu.memory_space<vmem>>, vector<1x1x32xf32>
    %12 = vector.shape_cast %11 : vector<1x1x32xf32> to vector<1x32xf32>
    %13 = arith.addf %12, %4 : vector<1x32xf32>
    %c0_6 = arith.constant 0 : index
    %c0_7 = arith.constant 0 : index
    %c0_8 = arith.constant 0 : index
    %14 = vector.load %arg5[%c0_6, %c0_7, %c0_8] : memref<1x8x32xf32, #tpu.memory_space<vmem>>, vector<1x1x32xf32>
    %15 = vector.shape_cast %14 : vector<1x1x32xf32> to vector<1x32xf32>
    %16 = vector.shape_cast %13 : vector<1x32xf32> to vector<1x1x32xf32>
    tpu.vector_store %arg5[%c0_6, %c0_7, %c0_8], %16 {strides = array<i32>} : memref<1x8x32xf32, #tpu.memory_space<vmem>>, vector<1x1x32xf32>,
    %c1_i32 = arith.constant 1 : i32
    %17 = arith.addi %2, %c1_i32 : i32
    %18 = arith.index_cast %17 : i32 to index
    %19 = memref.load %arg2[%18] : memref<16xi32, #tpu.memory_space<smem>>
    %c0_i32_9 = arith.constant 0 : i32
    %c15_i32_10 = arith.constant 15 : i32
    %20 = arith.maxsi %c0_i32_9, %19 : i32
    %21 = arith.minsi %c15_i32_10, %20 : i32
    %22 = arith.index_cast %21 : i32 to index
    %c0_11 = arith.constant 0 : index
    %c0_12 = arith.constant 0 : index
    %23 = vector.load %arg3[%22, %c0_11, %c0_12] : memref<16x1x32xf32, #tpu.memory_space<vmem>>, vector<1x1x32xf32>
    %24 = vector.shape_cast %23 : vector<1x1x32xf32> to vector<1x32xf32>
    %25 = arith.addf %24, %4 : vector<1x32xf32>
    %c0_13 = arith.constant 0 : index
    %c1 = arith.constant 1 : index
    %c0_14 = arith.constant 0 : index
    %26 = vector.load %arg5[%c0_13, %c1, %c0_14] : memref<1x8x32xf32, #tpu.memory_space<vmem>>, vector<1x1x32xf32>
    %27 = vector.shape_cast %26 : vector<1x1x32xf32> to vector<1x32xf32>
    %28 = vector.shape_cast %25 : vector<1x32xf32> to vector<1x1x32xf32>
    tpu.vector_store %arg5[%c0_13, %c1, %c0_14], %28 {strides = array<i32>} : memref<1x8x32xf32, #tpu.memory_space<vmem>>, vector<1x1x32xf32>,
    %c2_i32 = arith.constant 2 : i32
    %29 = arith.addi %2, %c2_i32 : i32
    %30 = arith.index_cast %29 : i32 to index
    %31 = memref.load %arg2[%30] : memref<16xi32, #tpu.memory_space<smem>>
    %c0_i32_15 = arith.constant 0 : i32
    %c15_i32_16 = arith.constant 15 : i32
    %32 = arith.maxsi %c0_i32_15, %31 : i32
    %33 = arith.minsi %c15_i32_16, %32 : i32
    %34 = arith.index_cast %33 : i32 to index
    %c0_17 = arith.constant 0 : index
    %c0_18 = arith.constant 0 : index
    %35 = vector.load %arg3[%34, %c0_17, %c0_18] : memref<16x1x32xf32, #tpu.memory_space<vmem>>, vector<1x1x32xf32>
    %36 = vector.shape_cast %35 : vector<1x1x32xf32> to vector<1x32xf32>
    %37 = arith.addf %36, %4 : vector<1x32xf32>
    %c0_19 = arith.constant 0 : index
    %c2 = arith.constant 2 : index
    %c0_20 = arith.constant 0 : index
    %38 = vector.load %arg5[%c0_19, %c2, %c0_20] : memref<1x8x32xf32, #tpu.memory_space<vmem>>, vector<1x1x32xf32>
    %39 = vector.shape_cast %38 : vector<1x1x32xf32> to vector<1x32xf32>
    %40 = vector.shape_cast %37 : vector<1x32xf32> to vector<1x1x32xf32>
    tpu.vector_store %arg5[%c0_19, %c2, %c0_20], %40 {strides = array<i32>} : memref<1x8x32xf32, #tpu.memory_space<vmem>>, vector<1x1x32xf32>,
    %c3_i32 = arith.constant 3 : i32
    %41 = arith.addi %2, %c3_i32 : i32
    %42 = arith.index_cast %41 : i32 to index
    %43 = memref.load %arg2[%42] : memref<16xi32, #tpu.memory_space<smem>>
    %c0_i32_21 = arith.constant 0 : i32
    %c15_i32_22 = arith.constant 15 : i32
    %44 = arith.maxsi %c0_i32_21, %43 : i32
    %45 = arith.minsi %c15_i32_22, %44 : i32
    %46 = arith.index_cast %45 : i32 to index
    %c0_23 = arith.constant 0 : index
    %c0_24 = arith.constant 0 : index
    %47 = vector.load %arg3[%46, %c0_23, %c0_24] : memref<16x1x32xf32, #tpu.memory_space<vmem>>, vector<1x1x32xf32>
    %48 = vector.shape_cast %47 : vector<1x1x32xf32> to vector<1x32xf32>
    %49 = arith.addf %48, %4 : vector<1x32xf32>
    %c0_25 = arith.constant 0 : index
    %c3 = arith.constant 3 : index
    %c0_26 = arith.constant 0 : index
    %50 = vector.load %arg5[%c0_25, %c3, %c0_26] : memref<1x8x32xf32, #tpu.memory_space<vmem>>, vector<1x1x32xf32>
    %51 = vector.shape_cast %50 : vector<1x1x32xf32> to vector<1x32xf32>
    %52 = vector.shape_cast %49 : vector<1x32xf32> to vector<1x1x32xf32>
    tpu.vector_store %arg5[%c0_25, %c3, %c0_26], %52 {strides = array<i32>} : memref<1x8x32xf32, #tpu.memory_space<vmem>>, vector<1x1x32xf32>,
    %c4_i32 = arith.constant 4 : i32
    %53 = arith.addi %2, %c4_i32 : i32
    %54 = arith.index_cast %53 : i32 to index
    %55 = memref.load %arg2[%54] : memref<16xi32, #tpu.memory_space<smem>>
    %c0_i32_27 = arith.constant 0 : i32
    %c15_i32_28 = arith.constant 15 : i32
    %56 = arith.maxsi %c0_i32_27, %55 : i32
    %57 = arith.minsi %c15_i32_28, %56 : i32
    %58 = arith.index_cast %57 : i32 to index
    %c0_29 = arith.constant 0 : index
    %c0_30 = arith.constant 0 : index
    %59 = vector.load %arg3[%58, %c0_29, %c0_30] : memref<16x1x32xf32, #tpu.memory_space<vmem>>, vector<1x1x32xf32>
    %60 = vector.shape_cast %59 : vector<1x1x32xf32> to vector<1x32xf32>
    %61 = arith.addf %60, %4 : vector<1x32xf32>
    %c0_31 = arith.constant 0 : index
    %c4 = arith.constant 4 : index
    %c0_32 = arith.constant 0 : index
    %62 = vector.load %arg5[%c0_31, %c4, %c0_32] : memref<1x8x32xf32, #tpu.memory_space<vmem>>, vector<1x1x32xf32>
    %63 = vector.shape_cast %62 : vector<1x1x32xf32> to vector<1x32xf32>
    %64 = vector.shape_cast %61 : vector<1x32xf32> to vector<1x1x32xf32>
    tpu.vector_store %arg5[%c0_31, %c4, %c0_32], %64 {strides = array<i32>} : memref<1x8x32xf32, #tpu.memory_space<vmem>>, vector<1x1x32xf32>,
    %c5_i32 = arith.constant 5 : i32
    %65 = arith.addi %2, %c5_i32 : i32
    %66 = arith.index_cast %65 : i32 to index
    %67 = memref.load %arg2[%66] : memref<16xi32, #tpu.memory_space<smem>>
    %c0_i32_33 = arith.constant 0 : i32
    %c15_i32_34 = arith.constant 15 : i32
    %68 = arith.maxsi %c0_i32_33, %67 : i32
    %69 = arith.minsi %c15_i32_34, %68 : i32
    %70 = arith.index_cast %69 : i32 to index
    %c0_35 = arith.constant 0 : index
    %c0_36 = arith.constant 0 : index
    %71 = vector.load %arg3[%70, %c0_35, %c0_36] : memref<16x1x32xf32, #tpu.memory_space<vmem>>, vector<1x1x32xf32>
    %72 = vector.shape_cast %71 : vector<1x1x32xf32> to vector<1x32xf32>
    %73 = arith.addf %72, %4 : vector<1x32xf32>
    %c0_37 = arith.constant 0 : index
    %c5 = arith.constant 5 : index
    %c0_38 = arith.constant 0 : index
    %74 = vector.load %arg5[%c0_37, %c5, %c0_38] : memref<1x8x32xf32, #tpu.memory_space<vmem>>, vector<1x1x32xf32>
    %75 = vector.shape_cast %74 : vector<1x1x32xf32> to vector<1x32xf32>
    %76 = vector.shape_cast %73 : vector<1x32xf32> to vector<1x1x32xf32>
    tpu.vector_store %arg5[%c0_37, %c5, %c0_38], %76 {strides = array<i32>} : memref<1x8x32xf32, #tpu.memory_space<vmem>>, vector<1x1x32xf32>,
    %c6_i32 = arith.constant 6 : i32
    %77 = arith.addi %2, %c6_i32 : i32
    %78 = arith.index_cast %77 : i32 to index
    %79 = memref.load %arg2[%78] : memref<16xi32, #tpu.memory_space<smem>>
    %c0_i32_39 = arith.constant 0 : i32
    %c15_i32_40 = arith.constant 15 : i32
    %80 = arith.maxsi %c0_i32_39, %79 : i32
    %81 = arith.minsi %c15_i32_40, %80 : i32
    %82 = arith.index_cast %81 : i32 to index
    %c0_41 = arith.constant 0 : index
    %c0_42 = arith.constant 0 : index
    %83 = vector.load %arg3[%82, %c0_41, %c0_42] : memref<16x1x32xf32, #tpu.memory_space<vmem>>, vector<1x1x32xf32>
    %84 = vector.shape_cast %83 : vector<1x1x32xf32> to vector<1x32xf32>
    %85 = arith.addf %84, %4 : vector<1x32xf32>
    %c0_43 = arith.constant 0 : index
    %c6 = arith.constant 6 : index
    %c0_44 = arith.constant 0 : index
    %86 = vector.load %arg5[%c0_43, %c6, %c0_44] : memref<1x8x32xf32, #tpu.memory_space<vmem>>, vector<1x1x32xf32>
    %87 = vector.shape_cast %86 : vector<1x1x32xf32> to vector<1x32xf32>
    %88 = vector.shape_cast %85 : vector<1x32xf32> to vector<1x1x32xf32>
    tpu.vector_store %arg5[%c0_43, %c6, %c0_44], %88 {strides = array<i32>} : memref<1x8x32xf32, #tpu.memory_space<vmem>>, vector<1x1x32xf32>,
    %c7_i32 = arith.constant 7 : i32
    %89 = arith.addi %2, %c7_i32 : i32
    %90 = arith.index_cast %89 : i32 to index
    %91 = memref.load %arg2[%90] : memref<16xi32, #tpu.memory_space<smem>>
    %c0_i32_45 = arith.constant 0 : i32
    %c15_i32_46 = arith.constant 15 : i32
    %92 = arith.maxsi %c0_i32_45, %91 : i32
    %93 = arith.minsi %c15_i32_46, %92 : i32
    %94 = arith.index_cast %93 : i32 to index
    %c0_47 = arith.constant 0 : index
    %c0_48 = arith.constant 0 : index
    %95 = vector.load %arg3[%94, %c0_47, %c0_48] : memref<16x1x32xf32, #tpu.memory_space<vmem>>, vector<1x1x32xf32>
    %96 = vector.shape_cast %95 : vector<1x1x32xf32> to vector<1x32xf32>
    %97 = arith.addf %96, %4 : vector<1x32xf32>
    %c0_49 = arith.constant 0 : index
    %c7 = arith.constant 7 : index
    %c0_50 = arith.constant 0 : index
    %98 = vector.load %arg5[%c0_49, %c7, %c0_50] : memref<1x8x32xf32, #tpu.memory_space<vmem>>, vector<1x1x32xf32>
    %99 = vector.shape_cast %98 : vector<1x1x32xf32> to vector<1x32xf32>
    %100 = vector.shape_cast %97 : vector<1x32xf32> to vector<1x1x32xf32>
    tpu.vector_store %arg5[%c0_49, %c7, %c0_50], %100 {strides = array<i32>} : memref<1x8x32xf32, #tpu.memory_space<vmem>>, vector<1x1x32xf32>,
    return
  }
  func.func @transform_0(%arg0: i32, %arg1: i32, %arg2: memref<16xi32, #tpu.memory_space<smem>>) -> (i32, i32, i32) {
    %c0_i32 = arith.constant 0 : i32
    %c0_i32_0 = arith.constant 0 : i32
    %c0_i32_1 = arith.constant 0 : i32
    %c0_i32_2 = arith.constant 0 : i32
    return %c0_i32, %c0_i32_0, %c0_i32_1 : i32, i32, i32
  }
  func.func @transform_1(%arg0: i32, %arg1: i32, %arg2: memref<16xi32, #tpu.memory_space<smem>>) -> (i32, i32, i32) {
    %c0_i32 = arith.constant 0 : i32
    %c0_i32_0 = arith.constant 0 : i32
    %c0_i32_1 = arith.constant 0 : i32
    return %arg0, %c0_i32, %c0_i32_0 : i32, i32, i32
  }
  func.func @transform_2(%arg0: i32, %arg1: i32, %arg2: memref<16xi32, #tpu.memory_space<smem>>) -> (i32, i32, i32) {
    %c0_i32 = arith.constant 0 : i32
    %c0_i32_0 = arith.constant 0 : i32
    return %arg0, %arg1, %c0_i32 : i32, i32, i32
  }
}

</mosaic_0001>

<bundles_post_ra>
// kernel: tpu_custom_call.1
= control target key start
LH: loop header
LB: loop body
LE: loop exit
PB: predicated region body
PF: predicated region fallthrough
CT: control target
= control target key end

     0   :  { %s852_s0 = inlined_call_operand.hbm [shape: s32[16], index: 0, kind: input, shape index: {}]   ;;  %s853_s1 = inlined_call_operand.hbm [shape: f32[16,1,32], index: 1, kind: input, shape index: {}]   ;;  %s854_s2 = inlined_call_operand.vmem [shape: f32[2,1,32], index: 2, kind: input, shape index: {}]   ;;  %s855_s3 = inlined_call_operand.hbm [shape: f32[2,8,32], index: 3, kind: output, shape index: {}]  }
   0x1   :  { %s492_s14 = scalar_lea.hbm %s852_s0, 16 }
   0x2   :  { %p493_p0 = scmp.ne.s32.totalorder %s852_s0, %s492_s14  ;;  %p496_p1 = scmp.lt.u32.totalorder %s492_s14, %s852_s0 }
   0x4   :  { %p498_p2 = pnand %p496_p1, %p493_p0 }
   0x6   :  { %501 = shalt.err (!%p498_p2)  }
   0x7   :  { %s616_s19 = smov [#allocation3]  }
   0x8   :  { %9 = dma.hbm_to_smem %s852_s0, 16, %s616_s19, [#allocation2] }
   0x9   :  { %582 = dma.done.wait [#allocation2], 16 }
   0xa   :  { %583 = vsyncadd [#allocation2], 4294967280 }
   0xb   :  { %11 = sfence }
   0xc   :  { %12 = vsyncpa [#allocation5], 0 }
   0xd   :  { %13 = vsyncpa [#allocation6], 0 }
   0xe   :  { %15 = vsyncpa [#allocation6 + $0x1], 0  ;;  %s653_s22 = smov 0   ;;  %s655_s23 = smov 0  }
   0xf   :  { %s657_s24 = smov 0   ;;  %s659_s25 = smov 0  }
  0x10   :  { %s661_s26 = smov 0   ;;  %s663_s27 = smov 0  }
  0x11 LB: > { %s354_s0 = sadd.s32 4294967295, %s614_s27   ;;  %s355_s28 = sadd.s32 4294967294, %s614_s27   ;;  %s614_s27 = sphi %s663_s27, %s21_s27   ;;  %s610_s26 = sphi %s661_s26, %s873_s26   ;;  %s606_s25 = sphi %s659_s25, %s872_s25   ;;  %s602_s24 = sphi %s657_s24, %s871_s24   ;;  %s598_s23 = sphi %s655_s23, %s870_s23   ;;  %s594_s22 = sphi %s653_s22, %s869_s22  }
  0x12   : > { %s33_s29 = sadd.s32 1, %s610_s26  ;;  %s89_s30 = sadd.s32 1, %s602_s24 }
  0x13   : > { %p35_p3 = scmp.ge.s32.totalorder %s33_s29, 2  ;;  %p99_p4 = scmp.ne.s32.totalorder %s602_s24, %s598_s23 }
  0x14   : > { %p100_p5 = scmp.eq.s32.totalorder %s354_s0, 1  ;;  %p105_p6 = scmp.ne.s32.totalorder %s598_s23, %s594_s22 }
  0x15   : > { %s875_s29 = smov (%p35_p3, %s33_s29), 0  ;;  %p106_p8 = scmp.eq.s32.totalorder %s355_s28, 1 }
  0x16   : > { %p693_p7 = por %p100_p5, %p99_p4  ;;  %s84_s5 = ssub.s32 %s610_s26, %s875_s29 }
  0x17   : > { %p356_p9 = scmp.ge.s32.totalorder %s614_s27, 1  ;;  %p87_p10 = scmp.eq.s32.totalorder %s84_s5, 0 }
  0x18   : > { %s860_s4 = scalar_select %p693_p7, 1, 0 }
  0x19   : > { %p700_p11 = por %p106_p8, %p105_p6  ;;  %p113_p12 = scmp.lt.s32.totalorder %s614_s27, 3 }
  0x1a   : > { %s706_s7 = scalar_select %p87_p10, %s602_s24, %s89_s30  }
  0x1b   : > { %s861_s6 = scalar_select %p700_p11, 1, 0 }
  0x1c   : > { %p708_p13 = pnand %p356_p9, %p113_p12  ;;  %p712_p0 = scmp.eq.s32.totalorder %s354_s0, 0 }
  0x1d   : > { %s617_s10 = smov [#allocation4]   ;;  %s502_s15 = scalar_lea.hbm %s853_s1, 256 }
  0x1e   : > { %s862_s8 = scalar_select %p708_p13, 1, 0 }
  0x1f   : > { %s863_s9 = scalar_select %p712_p0, 1, 0 }
  0x20   : > { %p429_p1 = pneg %p708_p13  ;;  %s125_s11 = sshll.u32 %s617_s10, 4  ;;  %s126_s11 = int_to_ptr.vmem [resolvable:$true] %s125_s11 }
  0x21   : > { %p503_p3 = scmp.ne.s32.totalorder %s853_s1, %s502_s15  ;;  %p509_p8 = scmp.lt.u32.totalorder %s502_s15, %s853_s1 }
  0x22   : > { %p720_p2 = pnand %p712_p0, %p429_p1 }
  0x24   : > { %p504_p4 = pneg %p720_p2 }
  0x26   : > { %p505_p5 = pnand %p504_p4, %p503_p3 }
  0x28   : > { %p506_p6 = pneg %p505_p5 }
  0x2a   : > { %p511_p9 = pnand %p509_p8, %p506_p6 }
  0x2c   : > { %514 = shalt.err (!%p511_p9)
}
  0x2d   : > { %s515_s20 = scalar_lea.vmem %s126_s11, 256  ;;  %p523_p11 = scmp.lt.s32.totalorder %s126_s11, %s126_s11 }
  0x2e   : > { %p516_p10 = scmp.ne.s32.totalorder %s126_s11, %s515_s20  ;;  %p524_p7 = scmp.lt.s32.totalorder %s515_s20, %s515_s20 }
  0x30   : > { %p518_p12 = pnand %p516_p10, %p504_p4  ;;  %p525_p0 = por %p524_p7, %p523_p11 }
  0x32   : > { %p519_p1 = pneg %p518_p12 }
  0x34   : > { %p526_p13 = pnand %p525_p0, %p519_p1 }
  0x36   : > { %529 = shalt.err (!%p526_p13)
}
  0x37   : > { %s618_s21 = smov 16   ;;  %s619_s0 = smov 1  }
  0x38   : > { %432 = dma.hbm_to_vmem [thread:$0]  (!%p720_p2), %s853_s1, 256, %s126_s11, [#allocation5], %s618_s21, %s618_s21, %s619_s0  }
  0x39   : > { %p865_p3 = scmp.ne.s32.totalorder %s862_s8, 0 }
  0x3a   : > { %p866_p5 = scmp.ne.s32.totalorder (!%p865_p3), %s863_s9, 0 }
  0x3b   : > { %147 = sbr.rel (%p865_p3) target bundleno = 125 (0x7d), region = 28 }
  0x42   : > { %585 = dma.done.wait (%p866_p5), [#allocation5], 256  }
  0x43   : > { %587 = vsyncadd (%p866_p5), [#allocation5], 4294967040  ;;  %s164_s5 = sand.u32 1, %s598_s23   ;;  %p167_p7 = scmp.lt.s32.totalorder %s606_s25, 1  ;;  %vm182_vm0 = vcmask 253952  }
  0x44   : > { %s361_s10 = sshll.u32 %s164_s5, 3  ;;  %s751_s12 = sshll.u32 %s606_s25, 3 }
  0x45   : > { %s174_s8 = sld [smem:[#allocation3 + %s751_s12]]  ;;  %s184_s11 = sadd.s32 1, %s751_s12 }
  0x46   : > { %s168_s9 = scalar_select %p167_p7, %s606_s25, 1 }
  0x47   : > { %s185_s16 = sld [smem:[#allocation3 + %s184_s11]]  ;;  %s194_s17 = sadd.s32 2, %s751_s12 }
  0x48   : > { %s169_s15 = scalar_lea.vmem %s854_s2, %s168_s9  ;;  %s204_s18 = sadd.s32 3, %s751_s12 }
  0x49   : > { %s195_s19 = sld [smem:[#allocation3 + %s194_s17]]  ;;  %s214_s21 = sadd.s32 4, %s751_s12  ;;  %v765_v0 = vld [vmem:[%s169_s15] sm:$0x1] }
  0x4a   : > { %s761_s20 = sld [smem:[#allocation3 + %s204_s18]]  ;;  %s224_s0 = sadd.s32 5, %s751_s12 }
  0x4b   : > { %p175_p11 = scmp.gt.s32.totalorder %s174_s8, 0  ;;  %p363_p13 = scmp.lt.s32.totalorder %s174_s8, 15 }
  0x4c   : > { %s768_s9 = scalar_lea.vmem [#allocation7], %s361_s10  ;;  %s215_s10 = sld [smem:[#allocation3 + %s214_s21]] }
  0x4d   : > { %s877_s8 = smov (!%p175_p11, %s174_s8), 0  ;;  %p186_p0 = scmp.gt.s32.totalorder %s185_s16, 0 }
  0x4e   : > { %p368_p2 = scmp.lt.s32.totalorder %s185_s16, 15  ;;  %s879_s8 = smov (!%p363_p13, %s877_s8), 15 }
  0x4f   : > { %s881_s16 = smov (!%p186_p0, %s185_s16), 0  ;;  %p196_p4 = scmp.gt.s32.totalorder %s195_s19, 0 }
  0x50   : > { %s179_s28 = scalar_lea.vmem [#allocation4], %s879_s8  ;;  %s883_s16 = smov (!%p368_p2, %s881_s16), 15 }
  0x51   : > { %v180_v1 = vld [vmem:[%s179_s28] sm:$0x1]  ;;  %s197_s30 = scalar_select %p196_p4, %s195_s19, 0 }
  0x52   : > { %v181_v2 = vadd.f32 %v180_v1, %v765_v0  ;;  %p373_p6 = scmp.lt.s32.totalorder %s195_s19, 15  ;;  %s190_s11 = scalar_lea.vmem [#allocation4], %s883_s16 }
  0x53   : > { %v191_v3 = vld [vmem:[%s190_s11] sm:$0x1]  ;;  %p206_p8 = scmp.gt.s32.totalorder %s761_s20, 0  ;;  %p378_p9 = scmp.lt.s32.totalorder %s761_s20, 15 }
  0x54   : > { %183 = vst.msk [vmem:[%s768_s9] sm:$0x1] %vm182_vm0, %v181_v2  ;;  %v192_v4 = vadd.f32 %v191_v3, %v765_v0  ;;  %s885_s30 = smov (!%p373_p6, %s197_s30), 15  ;;  %s225_s13 = sld [smem:[#allocation3 + %s224_s0]] }
  0x55   : > { %s887_s20 = smov (!%p206_p8, %s761_s20), 0  ;;  %s200_s8 = scalar_lea.vmem [#allocation4], %s885_s30 }
  0x56   : > { %193 = vst.msk [vmem:[%s768_s9 + $0x1] sm:$0x1] %vm182_vm0, %v192_v4  ;;  %v201_v5 = vld [vmem:[%s200_s8] sm:$0x1]  ;;  %s889_s20 = smov (!%p378_p9, %s887_s20), 15  ;;  %s234_s14 = sadd.s32 6, %s751_s12 }
  0x57   : > { %v202_v6 = vadd.f32 %v201_v5, %v765_v0  ;;  %s210_s15 = scalar_lea.vmem [#allocation4], %s889_s20  ;;  %s235_s16 = sld [smem:[#allocation3 + %s234_s14]] }
  0x58   : > { %v211_v7 = vld [vmem:[%s210_s15] sm:$0x1]  ;;  %s244_s17 = sadd.s32 7, %s751_s12  ;;  %p216_p10 = scmp.gt.s32.totalorder %s215_s10, 0 }
  0x59   : > { %203 = vst.msk [vmem:[%s768_s9 + $0x2] sm:$0x1] %vm182_vm0, %v202_v6  ;;  %v212_v8 = vadd.f32 %v211_v7, %v765_v0  ;;  %p383_p12 = scmp.lt.s32.totalorder %s215_s10, 15  ;;  %s245_s18 = sld [smem:[#allocation3 + %s244_s17]] }
  0x5a   : > { %s891_s10 = smov (!%p216_p10, %s215_s10), 0  ;;  %p226_p1 = scmp.gt.s32.totalorder %s225_s13, 0 }
  0x5b   : > { %213 = vst.msk [vmem:[%s768_s9 + $0x3] sm:$0x1] %vm182_vm0, %v212_v8  ;;  %p388_p3 = scmp.lt.s32.totalorder %s225_s13, 15  ;;  %s893_s10 = smov (!%p383_p12, %s891_s10), 15 }
  0x5c   : > { %s895_s13 = smov (!%p226_p1, %s225_s13), 0  ;;  %s220_s19 = scalar_lea.vmem [#allocation4], %s893_s10 }
  0x5d   : > { %p236_p5 = scmp.gt.s32.totalorder %s235_s16, 0  ;;  %v221_v9 = vld [vmem:[%s220_s19] sm:$0x1]  ;;  %s897_s13 = smov (!%p388_p3, %s895_s13), 15 }
  0x5e   : > { %v222_v10 = vadd.f32 %v221_v9, %v765_v0  ;;  %p393_p7 = scmp.lt.s32.totalorder %s235_s16, 15  ;;  %s230_s20 = scalar_lea.vmem [#allocation4], %s897_s13 }
  0x5f   : > { %s237_s12 = scalar_select %p236_p5, %s235_s16, 0  ;;  %v231_v11 = vld [vmem:[%s230_s20] sm:$0x1] }
  0x60   : > { %223 = vst.msk [vmem:[%s768_s9 + $0x4] sm:$0x1] %vm182_vm0, %v222_v10  ;;  %p246_p11 = scmp.gt.s32.totalorder %s245_s18, 0  ;;  %p398_p13 = scmp.lt.s32.totalorder %s245_s18, 15  ;;  %v232_v12 = vadd.f32 %v231_v11, %v765_v0 }
  0x61   : > { %s899_s12 = smov (!%p393_p7, %s237_s12), 15  ;;  %s404_s0 = sshll.u32 %s606_s25, 7 }
  0x62   : > { %s901_s18 = smov (!%p246_p11, %s245_s18), 0  ;;  %233 = vst.msk [vmem:[%s768_s9 + $0x5] sm:$0x1] %vm182_vm0, %v232_v12  ;;  %s240_s21 = scalar_lea.vmem [#allocation4], %s899_s12 }
  0x63   : > { %v241_v13 = vld [vmem:[%s240_s21] sm:$0x1]  ;;  %s903_s18 = smov (!%p398_p13, %s901_s18), 15  ;;  %s269_s28 = sshll.u32 %s768_s9, 4  ;;  %s803_s28 = int_to_ptr.vmem [resolvable:$true] %s269_s28 }
  0x64   : > { %v242_v14 = vadd.f32 %v241_v13, %v765_v0  ;;  %s250_s30 = scalar_lea.vmem [#allocation4], %s903_s18  ;;  %s801_s8 = scalar_lea.hbm %s855_s3, %s404_s0 }
  0x65   : > { %v251_v15 = vld [vmem:[%s250_s30] sm:$0x1]  ;;  %s255_s25 = scalar_lea.sflag [#allocation6], %s164_s5  ;;  %s530_s13 = scalar_lea.vmem %s803_s28, 128 }
  0x66   : > { %243 = vst.msk [vmem:[%s768_s9 + $0x6] sm:$0x1] %vm182_vm0, %v242_v14  ;;  %v252_v16 = vadd.f32 %v251_v15, %v765_v0  ;;  %p531_p0 = scmp.ne.s32.totalorder %s803_s28, %s530_s13  ;;  %p867_p2 = scmp.ne.s32.totalorder %s860_s4, 0 }
  0x67   : > { %s620_s14 = smov [#allocation7]  }
  0x68   : > { %253 = vst.msk [vmem:[%s768_s9 + $0x7] sm:$0x1] %vm182_vm0, %v252_v16  ;;  %p532_p4 = pnand %p531_p0, %p867_p2  ;;  %s534_s15 = sshll.u32 %s620_s14, 4  ;;  %s535_s15 = int_to_ptr.vmem [resolvable:$false] %s534_s15 }
  0x69   : > { %s536_s16 = scalar_lea.vmem %s535_s15, 256  ;;  %p537_p8 = scmp.lt.s32.totalorder %s803_s28, %s535_s15 }
  0x6a   : > { %p533_p6 = pneg %p532_p4  ;;  %p538_p9 = scmp.lt.s32.totalorder %s536_s16, %s530_s13 }
  0x6c   : > { %p539_p10 = por %p538_p9, %p537_p8 }
  0x6e   : > { %p540_p12 = pnand %p539_p10, %p533_p6 }
  0x70   : > { %543 = shalt.err (!%p540_p12)
}
  0x71   : > { %s544_s5 = scalar_lea.hbm %s801_s8, 128  ;;  %s548_s18 = scalar_lea.hbm %s855_s3, 256 }
  0x72   : > { %p545_p1 = scmp.ne.s32.totalorder %s801_s8, %s544_s5  ;;  %p549_p7 = scmp.lt.u32.totalorder %s801_s8, %s855_s3 }
  0x73   : > { %p550_p11 = scmp.lt.u32.totalorder %s548_s18, %s544_s5  ;;  %p552_p0 = scmp.lt.u32.totalorder %s544_s5, %s801_s8 }
  0x74   : > { %p546_p3 = pnand %p545_p1, %p867_p2 }
  0x75   : > { %p551_p13 = por %p550_p11, %p549_p7 }
  0x76   : > { %p547_p5 = pneg %p546_p3 }
  0x77   : > { %p553_p4 = por %p552_p0, %p551_p13 }
  0x79   : > { %p554_p6 = pnand %p553_p4, %p547_p5 }
  0x7b   : > { %557 = shalt.err (!%p554_p6)
}
  0x7c   : > { %427 = dma.vmem_to_hbm [thread:$0]  (%p867_p2), %s803_s28, 128, %s801_s8, %s255_s25  }
  0x7d PF: > { %p439_p8 = scmp.ge.s32.totalorder %s614_s27, 2  ;;  %s281_s20 = sand.u32 1, %s594_s22  }
  0x7e   : > { %p868_p9 = scmp.ne.s32.totalorder %s861_s6, 0  ;;  %s282_s21 = scalar_lea.sflag [#allocation6], %s281_s20 }
  0x80   : > { %p434_p10 = pnand %p439_p8, %p868_p9 }
  0x82   : > { %589 = dma.done.wait (!%p434_p10), %s282_s21, 128  }
  0x83   : > { %591 = vsyncadd (!%p434_p10), %s282_s21, 4294967168  ;;  %s21_s27 = sadd.s32 1, %s614_s27   ;;  %s869_s22 = smov %s598_s23 }
  0x84   : > { %p18_p12 = scmp.ge.s32.totalorder %s21_s27, 4   ;;  %s870_s23 = smov %s602_s24 }
  0x85   : > { %s871_s24 = smov %s706_s7  ;;  %s872_s25 = smov %s610_s26 }
  0x86   : > { %s873_s26 = smov %s875_s29  ;;  %20 = sbr.rel (!%p18_p12) target bundleno = 17 (0x11), region = 76 }
  0x8d   :  { %287 = vsyncpa [#allocation5], 1 }
  0x8e   :  { %289 = vsyncpa [#allocation5 + $0x1], 1 }
  0x8f   :  { %290 = vsyncpa [#allocation6], 1 }
  0x90   :  { %292 = vsyncpa [#allocation6 + $0x1], 1 }

</bundles_post_ra>
